<compile_context>
chip_gen: v6e
topology: v6e:2x2x1
jax: 0.10.0
libtpu: 0.0.40
codegen_flags: <defaults>
</compile_context>

<pallas_src>
import functools

import jax
import jax.numpy as jnp
from jax.experimental import pallas as pl
from jax.experimental.pallas import tpu as pltpu

LANES = 128
ROW_ALIGN = 32          # int8 native tiling is (32, 128): keep rows a multiple of 32
MAX_BLOCK_ROWS = 4096   # (4096, 128) f32 block = 2 MiB per input -> DMA-bound steady state


def _masked_mse_kernel(pred_ref, target_ref, mask_ref, sum_ref, cnt_ref, *,
                       steps_total, steps_per_core, gate_steps):
    c = pl.program_id(0)   # (up to 2) core-parallel chunks
    i = pl.program_id(1)   # sequential reduction steps within a chunk

    @pl.when(i == 0)
    def _():
        sum_ref[...] = jnp.zeros_like(sum_ref)
        cnt_ref[...] = jnp.zeros_like(cnt_ref)

    def accumulate():
        # math in f32 regardless of input dtype (f32 or bf16 inputs both fine)
        d = target_ref[...].astype(jnp.float32) - pred_ref[...].astype(jnp.float32)
        vmask = mask_ref[...] != 0                        # padded tail rows have mask == 0
        sq = jnp.where(vmask, d * d, jnp.float32(0.0))    # select: no NaN leakage
        cn = vmask.astype(jnp.float32)
        # reduce (block_rows, 128) -> (8, 128) with pure vreg adds and accumulate
        # into the resident output block (block index constant along axis i).
        sum_ref[0] += jnp.sum(sq.reshape(-1, 8, LANES), axis=0)
        cnt_ref[0] += jnp.sum(cn.reshape(-1, 8, LANES), axis=0)

    if gate_steps:
        # Only reached when the 2-core split leaves a duplicated trailing step:
        # skip the whole body (its DMA maps to a real block via the clamped
        # index_map, but it contributes nothing).
        @pl.when(c * steps_per_core + i < steps_total)
        def _():
            accumulate()
    else:
        accumulate()


def masked_mse_loss(pred, target, valid_mask):
    """pred/target: float arrays (any shape, e.g. NCHW); valid_mask: bool, same shape."""
    assert pred.shape == target.shape == valid_mask.shape, "inconsistent dimensions"

    n = pred.size
    # --- adaptive full-block tiling ---------------------------------------
    rows0 = pl.cdiv(n, LANES)                                  # 128-lane rows needed
    rows_aligned = pl.cdiv(rows0, ROW_ALIGN) * ROW_ALIGN       # int8 tiling alignment
    steps_total = pl.cdiv(rows_aligned, MAX_BLOCK_ROWS)
    block_rows = pl.cdiv(pl.cdiv(rows_aligned, steps_total), ROW_ALIGN) * ROW_ALIGN
    rows = steps_total * block_rows                            # every block is full
    pad = rows * LANES - n

    p = pred.reshape(-1)
    t = target.reshape(-1)
    m = valid_mask.reshape(-1).astype(jnp.int8)                # 1 byte/elem mask traffic
    if pad:                                                    # only pad when needed
        p = jnp.pad(p, (0, pad))
        t = jnp.pad(t, (0, pad))
        m = jnp.pad(m, (0, pad))                               # padded elements masked out

    p = p.reshape(rows, LANES)
    t = t.reshape(rows, LANES)
    m = m.reshape(rows, LANES)

    # Split the reduction over (up to) two TensorCores (v7x); sequential elsewhere.
    num_cores = 2 if steps_total >= 2 else 1
    steps_per_core = pl.cdiv(steps_total, num_cores)
    grid = (num_cores, steps_per_core)
    gate_steps = (num_cores * steps_per_core) != steps_total   # odd step count -> 1 dup step

    if gate_steps:
        def row_block_index(c, i):
            # Clamp so the duplicated step never maps to an out-of-range DMA;
            # its contribution is skipped inside the kernel via pl.when.
            return (jnp.minimum(c * steps_per_core + i, steps_total - 1), 0)
    else:
        def row_block_index(c, i):
            return (c * steps_per_core + i, 0)

    in_spec = pl.BlockSpec((block_rows, LANES), row_block_index)
    out_spec = pl.BlockSpec((1, 8, LANES), lambda c, i: (c, 0, 0))

    kernel = functools.partial(
        _masked_mse_kernel,
        steps_total=steps_total,
        steps_per_core=steps_per_core,
        gate_steps=gate_steps,
    )

    sums, cnts = pl.pallas_call(
        kernel,
        out_shape=(
            jax.ShapeDtypeStruct((num_cores, 8, LANES), jnp.float32),
            jax.ShapeDtypeStruct((num_cores, 8, LANES), jnp.float32),
        ),
        grid_spec=pltpu.PrefetchScalarGridSpec(
            num_scalar_prefetch=0,
            grid=grid,
            in_specs=[in_spec, in_spec, in_spec],
            out_specs=[out_spec, out_spec],
        ),
        compiler_params=pltpu.CompilerParams(
            dimension_semantics=("parallel", "arbitrary"),
        ),
    )(p, t, m)

    # tiny final reduce + divide (NaN if mask is all-False, matching torch)
    return (jnp.sum(sums) / jnp.sum(cnts)).astype(jnp.float32)


if __name__ == "__main__":
    key = jax.random.PRNGKey(0)
    kp, kt, km = jax.random.split(key, 3)

    shape = (2, 4, 16, 16)  # NCHW
    pred = jax.random.normal(kp, shape, dtype=jnp.float32)
    target = jax.random.normal(kt, shape, dtype=jnp.float32)
    valid_mask = jax.random.uniform(km, shape) > 0.5

    loss = masked_mse_loss(pred, target, valid_mask)
    jax.block_until_ready(loss)

    # reference check in plain JAX
    diff = target - pred
    mask_f = valid_mask.astype(jnp.float32)
    ref = jnp.sum(diff * diff * mask_f) / jnp.sum(mask_f)
    assert jnp.allclose(loss, ref, rtol=1e-5, atol=1e-6), (loss, ref)

    print("KERNEL_OK")
</pallas_src>

<mosaic_0001>
module attributes {stable_mosaic.version = 11 : i64} {
  func.func @_masked_mse_kernel(%arg0: i32, %arg1: i32, %arg2: memref<32x128xf32, #tpu.memory_space<vmem>>, %arg3: memref<32x128xf32, #tpu.memory_space<vmem>>, %arg4: memref<32x128xi8, #tpu.memory_space<vmem>>, %arg5: memref<1x8x128xf32, #tpu.memory_space<vmem>>, %arg6: memref<1x8x128xf32, #tpu.memory_space<vmem>>) attributes {dimension_semantics = [#tpu.dimension_semantics<parallel>, #tpu.dimension_semantics<arbitrary>], iteration_bounds = array<i64: 1, 1>, scalar_prefetch = 0 : i64, scratch_operands = 0 : i64, tpu.core_type = #tpu.core_type<tc>, window_params = [{transform_indices = @transform_0, window_bounds = array<i64: 32, 128>}, {transform_indices = @transform_1, window_bounds = array<i64: 32, 128>}, {transform_indices = @transform_2, window_bounds = array<i64: 32, 128>}, {transform_indices = @transform_3, window_bounds = array<i64: 1, 8, 128>}, {transform_indices = @transform_4, window_bounds = array<i64: 1, 8, 128>}]} {
    %c0_i32 = arith.constant 0 : i32
    %0 = arith.cmpi eq, %arg1, %c0_i32 : i32
    %1 = arith.extui %0 : i1 to i32
    %c0_i32_0 = arith.constant 0 : i32
    %2 = arith.cmpi ne, %1, %c0_i32_0 : i32
    scf.if %2 {
      %cst_20 = arith.constant 0.000000e+00 : f32
      %30 = vector.broadcast %cst_20 : f32 to vector<1x8x128xf32>
      %c0_21 = arith.constant 0 : index
      %c0_22 = arith.constant 0 : index
      %c0_23 = arith.constant 0 : index
      %31 = vector.load %arg5[%c0_21, %c0_22, %c0_23] : memref<1x8x128xf32, #tpu.memory_space<vmem>>, vector<1x8x128xf32>
      tpu.vector_store %arg5[%c0_21, %c0_22, %c0_23], %30 {strides = array<i32>} : memref<1x8x128xf32, #tpu.memory_space<vmem>>, vector<1x8x128xf32>,
      %cst_24 = arith.constant 0.000000e+00 : f32
      %32 = vector.broadcast %cst_24 : f32 to vector<1x8x128xf32>
      %c0_25 = arith.constant 0 : index
      %c0_26 = arith.constant 0 : index
      %c0_27 = arith.constant 0 : index
      %33 = vector.load %arg6[%c0_25, %c0_26, %c0_27] : memref<1x8x128xf32, #tpu.memory_space<vmem>>, vector<1x8x128xf32>
      tpu.vector_store %arg6[%c0_25, %c0_26, %c0_27], %32 {strides = array<i32>} : memref<1x8x128xf32, #tpu.memory_space<vmem>>, vector<1x8x128xf32>,
    } else {
    }
    %c0 = arith.constant 0 : index
    %c0_1 = arith.constant 0 : index
    %3 = vector.load %arg3[%c0, %c0_1] : memref<32x128xf32, #tpu.memory_space<vmem>>, vector<32x128xf32>
    %c0_2 = arith.constant 0 : index
    %c0_3 = arith.constant 0 : index
    %4 = vector.load %arg2[%c0_2, %c0_3] : memref<32x128xf32, #tpu.memory_space<vmem>>, vector<32x128xf32>
    %5 = arith.subf %3, %4 : vector<32x128xf32>
    %c0_4 = arith.constant 0 : index
    %c0_5 = arith.constant 0 : index
    %6 = vector.load %arg4[%c0_4, %c0_5] : memref<32x128xi8, #tpu.memory_space<vmem>>, vector<32x128xi8>
    %c0_i8 = arith.constant 0 : i8
    %7 = vector.broadcast %c0_i8 : i8 to vector<32x128xi8>
    %8 = arith.cmpi ne, %6, %7 : vector<32x128xi8>
    %9 = arith.mulf %5, %5 : vector<32x128xf32>
    %cst = arith.constant 0.000000e+00 : f32
    %10 = vector.broadcast %cst : f32 to vector<32x128xf32>
    %11 = arith.select %8, %9, %10 : vector<32x128xi1>, vector<32x128xf32>
    %12 = arith.extui %8 : vector<32x128xi1> to vector<32x128xi32>
    %13 = arith.sitofp %12 : vector<32x128xi32> to vector<32x128xf32>
    %c0_6 = arith.constant 0 : index
    %c0_7 = arith.constant 0 : index
    %c0_8 = arith.constant 0 : index
    %14 = vector.load %arg5[%c0_6, %c0_7, %c0_8] : memref<1x8x128xf32, #tpu.memory_space<vmem>>, vector<1x8x128xf32>
    %15 = vector.shape_cast %14 : vector<1x8x128xf32> to vector<8x128xf32>
    %16 = vector.shape_cast %11 : vector<32x128xf32> to vector<4x8x128xf32>
    %cst_9 = arith.constant dense<0.000000e+00> : vector<8x128xf32>
    %17 = vector.multi_reduction <add>, %16, %cst_9 [0] : vector<4x8x128xf32> to vector<8x128xf32>
    %18 = arith.addf %15, %17 : vector<8x128xf32>
    %c0_10 = arith.constant 0 : index
    %c0_11 = arith.constant 0 : index
    %c0_12 = arith.constant 0 : index
    %19 = vector.load %arg5[%c0_10, %c0_11, %c0_12] : memref<1x8x128xf32, #tpu.memory_space<vmem>>, vector<1x8x128xf32>
    %20 = vector.shape_cast %19 : vector<1x8x128xf32> to vector<8x128xf32>
    %21 = vector.shape_cast %18 : vector<8x128xf32> to vector<1x8x128xf32>
    tpu.vector_store %arg5[%c0_10, %c0_11, %c0_12], %21 {strides = array<i32>} : memref<1x8x128xf32, #tpu.memory_space<vmem>>, vector<1x8x128xf32>,
    %c0_13 = arith.constant 0 : index
    %c0_14 = arith.constant 0 : index
    %c0_15 = arith.constant 0 : index
    %22 = vector.load %arg6[%c0_13, %c0_14, %c0_15] : memref<1x8x128xf32, #tpu.memory_space<vmem>>, vector<1x8x128xf32>
    %23 = vector.shape_cast %22 : vector<1x8x128xf32> to vector<8x128xf32>
    %24 = vector.shape_cast %13 : vector<32x128xf32> to vector<4x8x128xf32>
    %cst_16 = arith.constant dense<0.000000e+00> : vector<8x128xf32>
    %25 = vector.multi_reduction <add>, %24, %cst_16 [0] : vector<4x8x128xf32> to vector<8x128xf32>
    %26 = arith.addf %23, %25 : vector<8x128xf32>
    %c0_17 = arith.constant 0 : index
    %c0_18 = arith.constant 0 : index
    %c0_19 = arith.constant 0 : index
    %27 = vector.load %arg6[%c0_17, %c0_18, %c0_19] : memref<1x8x128xf32, #tpu.memory_space<vmem>>, vector<1x8x128xf32>
    %28 = vector.shape_cast %27 : vector<1x8x128xf32> to vector<8x128xf32>
    %29 = vector.shape_cast %26 : vector<8x128xf32> to vector<1x8x128xf32>
    tpu.vector_store %arg6[%c0_17, %c0_18, %c0_19], %29 {strides = array<i32>} : memref<1x8x128xf32, #tpu.memory_space<vmem>>, vector<1x8x128xf32>,
    return
  }
  func.func @transform_0(%arg0: i32, %arg1: i32) -> (i32, i32) {
    %c1_i32 = arith.constant 1 : i32
    %0 = arith.muli %arg0, %c1_i32 : i32
    %1 = arith.addi %0, %arg1 : i32
    %c0_i32 = arith.constant 0 : i32
    %c0_i32_0 = arith.constant 0 : i32
    return %1, %c0_i32 : i32, i32
  }
  func.func @transform_1(%arg0: i32, %arg1: i32) -> (i32, i32) {
    %c1_i32 = arith.constant 1 : i32
    %0 = arith.muli %arg0, %c1_i32 : i32
    %1 = arith.addi %0, %arg1 : i32
    %c0_i32 = arith.constant 0 : i32
    %c0_i32_0 = arith.constant 0 : i32
    return %1, %c0_i32 : i32, i32
  }
  func.func @transform_2(%arg0: i32, %arg1: i32) -> (i32, i32) {
    %c1_i32 = arith.constant 1 : i32
    %0 = arith.muli %arg0, %c1_i32 : i32
    %1 = arith.addi %0, %arg1 : i32
    %c0_i32 = arith.constant 0 : i32
    %c0_i32_0 = arith.constant 0 : i32
    return %1, %c0_i32 : i32, i32
  }
  func.func @transform_3(%arg0: i32, %arg1: i32) -> (i32, i32, i32) {
    %c0_i32 = arith.constant 0 : i32
    %c0_i32_0 = arith.constant 0 : i32
    %c0_i32_1 = arith.constant 0 : i32
    return %arg0, %c0_i32, %c0_i32_0 : i32, i32, i32
  }
  func.func @transform_4(%arg0: i32, %arg1: i32) -> (i32, i32, i32) {
    %c0_i32 = arith.constant 0 : i32
    %c0_i32_0 = arith.constant 0 : i32
    %c0_i32_1 = arith.constant 0 : i32
    return %arg0, %c0_i32, %c0_i32_0 : i32, i32, i32
  }
}

</mosaic_0001>

<bundles_post_ra>
// kernel: tpu_custom_call.1
= control target key start
LH: loop header
LB: loop body
LE: loop exit
PB: predicated region body
PF: predicated region fallthrough
CT: control target
= control target key end

     0   :  { %10 = vsyncpa [#allocation3], 0  ;;  %s352_s0 = inlined_call_operand.hbm [shape: f32[32,128], index: 0, kind: input, shape index: {}]   ;;  %s353_s1 = inlined_call_operand.hbm [shape: f32[32,128], index: 1, kind: input, shape index: {}]   ;;  %s354_s2 = inlined_call_operand.hbm [shape: s8[32,128], index: 2, kind: input, shape index: {}]   ;;  %s355_s3 = inlined_call_operand.hbm [shape: f32[1,8,128], index: 3, kind: output, shape index: {0}]   ;;  %s356_s4 = inlined_call_operand.hbm [shape: f32[1,8,128], index: 4, kind: output, shape index: {1}]  }
   0x1   :  { %11 = vsyncpa [#allocation6], 0 }
   0x2   :  { %12 = vsyncpa [#allocation4], 0 }
   0x3   :  { %13 = vsyncpa [#allocation10], 0  ;;  %s303_s15 = smov [#allocation5]   ;;  %s304_s17 = smov [#allocation2]  }
   0x4   :  { %s39_s16 = sshll.u32 %s303_s15, 4  ;;  %s23_s18 = sshll.u32 %s304_s17, 4  ;;  %s40_s16 = int_to_ptr.vmem [resolvable:$true] %s39_s16  ;;  %s24_s18 = int_to_ptr.vmem [resolvable:$true] %s23_s18 }
   0x5   :  { %s203_s19 = scalar_lea.vmem %s40_s16, 512  ;;  %p208_p1 = scmp.lt.s32.totalorder %s40_s16, %s40_s16 }
   0x6   :  { %p204_p0 = scmp.ne.s32.totalorder %s40_s16, %s203_s19  ;;  %p209_p2 = scmp.lt.s32.totalorder %s203_s19, %s203_s19 }
   0x8   :  { %p210_p3 = por %p209_p2, %p208_p1 }
   0xa   :  { %p211_p4 = pnand %p210_p3, %p204_p0 }
   0xc   :  { %214 = shalt.err (!%p211_p4)
}
   0xd   :  { %s305_s20 = smov 128   ;;  %s306_s21 = smov 8  }
   0xe   :  { %45 = dma.hbm_to_vmem [thread:$0]  %s353_s1, 512, %s40_s16, [#allocation6], %s305_s20, %s305_s20, %s306_s21  }
   0xf   :  { %s223_s24 = scalar_lea.vmem %s24_s18, 512  ;;  %p228_p6 = scmp.lt.s32.totalorder %s24_s18, %s24_s18 }
  0x10   :  { %p224_p5 = scmp.ne.s32.totalorder %s24_s18, %s223_s24  ;;  %p229_p7 = scmp.lt.s32.totalorder %s223_s24, %s223_s24 }
  0x12   :  { %p230_p8 = por %p229_p7, %p228_p6 }
  0x14   :  { %p231_p9 = pnand %p230_p8, %p224_p5 }
  0x16   :  { %234 = shalt.err (!%p231_p9)
}
  0x17   :  { %29 = dma.hbm_to_vmem [thread:$0]  %s352_s0, 512, %s24_s18, [#allocation3], %s305_s20, %s305_s20, %s306_s21  }
  0x18   :  { %s307_s27 = smov [#allocation7]  }
  0x19   :  { %s55_s28 = sshll.u32 %s307_s27, 4  ;;  %s56_s28 = int_to_ptr.vmem [resolvable:$true] %s55_s28 }
  0x1a   :  { %s243_s29 = scalar_lea.vmem %s56_s28, 128  ;;  %p248_p11 = scmp.lt.s32.totalorder %s56_s28, %s56_s28 }
  0x1b   :  { %p244_p10 = scmp.ne.s32.totalorder %s56_s28, %s243_s29  ;;  %p249_p12 = scmp.lt.s32.totalorder %s243_s29, %s243_s29 }
  0x1d   :  { %p250_p13 = por %p249_p12, %p248_p11 }
  0x1f   :  { %p251_p0 = pnand %p250_p13, %p244_p10 }
  0x21   :  { %254 = shalt.err (!%p251_p0)
}
  0x22   :  { %58 = dma.hbm_to_vmem [thread:$0]  %s354_s2, 128, %s56_s28, [#allocation6]  }
  0x23   :  { %295 = dma.done.wait [#allocation3], 512  }
  0x24   :  { %296 = vsyncadd [#allocation3], 4294966784 }
  0x25   :  { %297 = dma.done.wait [#allocation6], 640  }
  0x26   :  { %298 = vsyncadd [#allocation6], 4294966656  ;;  %v93_v0 = vld [vmem:[#allocation7] sm:$0xff]  ;;  %v82_v2 = vld [vmem:[#allocation5 + $0x8] sm:$0xff]  ;;  %v308_v7 = vmov 0   ;;  %v309_v43 = vmov 0.0  }
  0x27   :  { %v81_v1 = vld [vmem:[#allocation5] sm:$0xff]  ;;  %vm94_vm0 = vnez %v93_v0  ;;  %v83_v4 = vld [vmem:[#allocation5 + $0x10] sm:$0xff]  ;;  %v86_v5 = vld [vmem:[#allocation2 + $0x8] sm:$0xff]  ;;  %s310_s0 = smov [#allocation8]   ;;  %s311_s5 = smov [#allocation9]  }
  0x28   :  { %v85_v3 = vld [vmem:[#allocation2] sm:$0xff]  ;;  %v87_v6 = vld [vmem:[#allocation2 + $0x10] sm:$0xff]  ;;  %v99_v8 = vsel %vm94_vm0, 16843009, %v308_v7  ;;  %v84_v14 = vld [vmem:[#allocation5 + $0x18] sm:$0xff]  ;;  %v90_v16 = vsub.f32 %v82_v2, %v86_v5  ;;  %s158_s2 = sshll.u32 %s310_s0, 4  ;;  %s159_s2 = int_to_ptr.vmem [resolvable:$true] %s158_s2 }
  0x29   :  { %v100_v9 = vunpack.c.0.s8 %v99_v8  ;;  %v101_v10 = vunpack.c.1.s8 %v99_v8  ;;  %v89_v11 = vsub.f32 %v81_v1, %v85_v3  ;;  %v102_v12 = vunpack.c.2.s8 %v99_v8  ;;  %v88_v15 = vld [vmem:[#allocation2 + $0x18] sm:$0xff]  ;;  %s168_s6 = sshll.u32 %s311_s5, 4  ;;  %s255_s7 = scalar_lea.vmem %s159_s2, 128  ;;  %s169_s6 = int_to_ptr.vmem [resolvable:$true] %s168_s6 }
  0x2a   :  { %v103_v13 = vunpack.c.3.s8 %v99_v8  ;;  %v91_v17 = vsub.f32 %v83_v4, %v87_v6  ;;  %v92_v24 = vsub.f32 %v84_v14, %v88_v15  ;;  %v96_v28 = vmul.f32 %v90_v16, %v90_v16  ;;  %p256_p1 = scmp.ne.s32.totalorder %s159_s2, %s255_s7  ;;  %p260_p2 = scmp.lt.s32.totalorder %s159_s2, %s159_s2 }
  0x2b   :  { %v104_v18 = vpack.c.b16 %v100_v9, %v100_v9  ;;  %v106_v19 = vpack.c.b16 %v101_v10, %v101_v10  ;;  %v108_v20 = vpack.c.b16 %v102_v12, %v102_v12  ;;  %v95_v25 = vmul.f32 %v89_v11, %v89_v11  ;;  %p261_p3 = scmp.lt.s32.totalorder %s255_s7, %s255_s7 }
  0x2c   :  { %v110_v21 = vpack.c.b16 %v103_v13, %v103_v13  ;;  %v97_v29 = vmul.f32 %v91_v17, %v91_v17  ;;  %v98_v36 = vmul.f32 %v92_v24, %v92_v24 }
  0x2d   :  { %v105_v22 = vpack.c.b8 %v104_v18, %v104_v18  ;;  %v107_v23 = vpack.c.b8 %v106_v19, %v106_v19  ;;  %v109_v26 = vpack.c.b8 %v108_v20, %v108_v20  ;;  %p262_p4 = por %p261_p3, %p260_p2 }
  0x2e   :  { %v111_v27 = vpack.c.b8 %v110_v21, %v110_v21 }
  0x2f   :  { %vm112_vm1 = vnez %v105_v22  ;;  %vm113_vm2 = vnez %v107_v23  ;;  %vm114_vm3 = vnez %v109_v26  ;;  %p263_p5 = pnand %p262_p4, %p256_p1 }
  0x30   :  { %vm115_vm4 = vnez %v111_v27  ;;  %v116_v30 = vsel %vm112_vm1, 16843009, %v308_v7  ;;  %v117_v31 = vsel %vm113_vm2, 16843009, %v308_v7  ;;  %v118_v32 = vsel %vm114_vm3, 16843009, %v308_v7 }
  0x31   :  { %v119_v33 = vsel %vm115_vm4, 16843009, %v308_v7  ;;  %v120_v34 = vunpack.c.0.s8 %v116_v30  ;;  %v121_v35 = vunpack.c.0.s8 %v117_v31  ;;  %v122_v37 = vunpack.c.0.s8 %v118_v32 }
  0x32   :  { %v123_v38 = vunpack.c.0.s8 %v119_v33 }
  0x33   :  { %vm124_vm5 = vcmp.ne.s32.totalorder %v120_v34, 0  ;;  %vm125_vm6 = vcmp.ne.s32.totalorder %v121_v35, 0  ;;  %vm126_vm7 = vcmp.ne.s32.totalorder %v122_v37, 0 }
  0x34   :  { %vm127_vm8 = vcmp.ne.s32.totalorder %v123_v38, 0  ;;  %v128_v39 = vsel %vm124_vm5, %v95_v25, 0.0  ;;  %v129_v40 = vsel %vm125_vm6, %v96_v28, 0.0  ;;  %v130_v41 = vsel %vm126_vm7, %v97_v29, 0.0 }
  0x35   :  { %v141_v42 = vadd.f32 %v129_v40, %v128_v39  ;;  %v182_v44 = vsel %vm124_vm5, 1.0, %v309_v43  ;;  %v131_v45 = vsel %vm127_vm8, %v98_v36, 0.0  ;;  %v183_v46 = vsel %vm125_vm6, 1.0, %v309_v43 }
  0x36   :  { %v184_v47 = vsel %vm126_vm7, 1.0, %v309_v43  ;;  %v147_v49 = vadd.f32 %v183_v46, %v182_v44  ;;  %v185_v50 = vsel %vm127_vm8, 1.0, %v309_v43 }
  0x37   :  { %v142_v48 = vadd.f32 %v141_v42, %v130_v41 }
  0x38   :  { %v148_v52 = vadd.f32 %v184_v47, %v147_v49 }
  0x39   :  { %v143_v51 = vadd.f32 %v142_v48, %v131_v45 }
  0x3a   :  { %v149_v53 = vadd.f32 %v185_v50, %v148_v52 }
  0x3b   :  { %145 = vst [vmem:[#allocation8] sm:$0xff] %v143_v51 }
  0x3c   :  { %266 = shalt.err (!%p263_p5)
}
  0x3d   :  { %161 = dma.vmem_to_hbm [thread:$0]  %s159_s2, 128, %s355_s3, [#allocation4]   ;;  %151 = vst [vmem:[#allocation9] sm:$0xff] %v149_v53 }
  0x3e   :  { %s275_s10 = scalar_lea.vmem %s169_s6, 128  ;;  %p280_p7 = scmp.lt.s32.totalorder %s169_s6, %s169_s6 }
  0x3f   :  { %p276_p6 = scmp.ne.s32.totalorder %s169_s6, %s275_s10  ;;  %p281_p8 = scmp.lt.s32.totalorder %s275_s10, %s275_s10 }
  0x41   :  { %p282_p9 = por %p281_p8, %p280_p7 }
  0x43   :  { %p283_p10 = pnand %p282_p9, %p276_p6 }
  0x45   :  { %286 = shalt.err (!%p283_p10)
}
  0x46   :  { %171 = dma.vmem_to_hbm [thread:$0]  %s169_s6, 128, %s356_s4, [#allocation10]  }
  0x47   :  { %299 = dma.done.wait [#allocation4], 128  }
  0x48   :  { %300 = vsyncadd [#allocation4], 4294967168 }
  0x49   :  { %301 = dma.done.wait [#allocation10], 128  }
  0x4a   :  { %302 = vsyncadd [#allocation10], 4294967168 }
  0x4b   :  { %178 = vsyncpa [#allocation3], 1 }
  0x4c   :  { %179 = vsyncpa [#allocation6], 1 }
  0x4d   :  { %180 = vsyncpa [#allocation4], 1 }
  0x4e   :  { %181 = vsyncpa [#allocation10], 1 }

</bundles_post_ra>
